<compile_context>
chip_gen: v7x
topology: tpu7x:2x2x1
jax: 0.10.0
libtpu: 0.0.40
codegen_flags: <defaults>
</compile_context>

<pallas_src>
import functools

import numpy as np
import jax
import jax.numpy as jnp
from jax import lax
from jax.experimental import pallas as pl
from jax.experimental.pallas import tpu as pltpu


def _round_up(x, m):
    return (x + m - 1) // m * m


def _fused_block_kernel(x_ref, w1_ref, b1_ref, w2_ref, b2_ref, *rest,
                        K, E, L_mid, L_ext, L_out, L_id, off_up,
                        cout, has_adjust):
    """Whole DecoderResidualBlock for one batch element, NCL (C-sublane, L-lane).

    x_ref  : (1, Cin_p, L_slab)   zero-inserted + edge-padded input slab (f32)
    w1_ref : (Cout_p, K*Cin_p)    conv1 weights, tap-flipped + flattened
    b1_ref : (Cout_p, 1)
    w2_ref : (Cout_p, K*Cout_p)   conv2 weights, tap-flipped + flattened
    b2_ref : (Cout_p, 1)
    rest   : (wadj_ref, badj_ref, o_ref)  if has_adjust (1x1 stride-2 adjust conv)
             (xres_ref, o_ref)            otherwise (identity passthrough)
    o_ref  : (1, cout, L_out)
    """
    if has_adjust:
        wadj_ref, badj_ref, o_ref = rest
    else:
        xres_ref, o_ref = rest

    f32 = jnp.float32
    xs = x_ref[0]                                   # (Cin_p, L_slab), f32
    cout_p = w1_ref.shape[0]
    mxu_dtype = w1_ref.dtype

    # ---- conv1 (stride-2 ConvTranspose1d in correlation form) + ReLU --------
    # Single (Cout_p, K*Cin_p) x (K*Cin_p, L_ext) MXU matmul; the K tap-shifted
    # windows are stacked along the 8-aligned sublane axis.
    x1 = jnp.concatenate([xs[:, k:k + L_ext] for k in range(K)], axis=0)
    out1 = jnp.dot(w1_ref[...], x1.astype(mxu_dtype),
                   preferred_element_type=f32)
    out1 = jnp.maximum(out1 + b1_ref[...], 0.0)      # (Cout_p, L_ext), f32
    # Zero outside conv1's true output range [E, E + L_mid): this *is* conv2's
    # implicitly zero-padded input (avoids any lane-dim concat/pad in-kernel).
    lane1 = lax.broadcasted_iota(jnp.int32, (cout_p, L_ext), 1)
    out1 = jnp.where((lane1 >= E) & (lane1 < E + L_mid), out1, 0.0)

    # ---- conv2 (stride-1 ConvTranspose1d), single matmul ---------------------
    x2 = jnp.concatenate([out1[:, k:k + L_out] for k in range(K)], axis=0)
    out2 = jnp.dot(w2_ref[...], x2.astype(mxu_dtype),
                   preferred_element_type=f32)
    out2 = out2 + b2_ref[...]                        # (Cout_p, L_out), f32

    # ---- identity path -------------------------------------------------------
    if has_adjust:
        # 1x1 stride-2 transposed conv on the zero-inserted input; the window is
        # taken straight from the slab so positions past the input are already 0.
        xw = xs[:, off_up:off_up + L_out]            # (Cin_p, L_out)
        idc = jnp.dot(wadj_ref[...], xw.astype(mxu_dtype),
                      preferred_element_type=f32)
        lane2 = lax.broadcasted_iota(jnp.int32, (cout_p, L_out), 1)
        # Bias everywhere inside the adjust-conv's length L_id, zero beyond
        # (that zero region is PyTorch's F.pad of the residual).
        identity = idc + jnp.where(lane2 < L_id, badj_ref[...], 0.0)
    else:
        identity = xres_ref[0]                       # (Cout_p, L_out), f32

    out = jnp.maximum(out2 + identity, 0.0)
    o_ref[0] = out[:cout].astype(o_ref.dtype)


def decoder_residual_block(x_ncl, params, *, kernel_size, padding,
                           output_padding, mxu_dtype=jnp.bfloat16):
    """Forward pass matching DecoderResidualBlock.forward (input/output NCL)."""
    N, Cin, L_in = x_ncl.shape
    K = kernel_size
    Cout = params["w1"].shape[1]
    pad, opad = padding, output_padding

    lpad1 = K - 1 - pad                       # conv1 correlation-form left pad
    rpad1 = K - 1 - pad + opad                # conv1 correlation-form right pad
    E = K - 1 - pad                           # conv2 correlation-form pad
    assert lpad1 >= 0 and rpad1 >= 0, "unsupported: padding > kernel_size - 1"

    L_up = (L_in - 1) * 2 + 1                       # zero-inserted length
    L_mid = (L_in - 1) * 2 - 2 * pad + K + opad     # conv1 output length
    L_out = L_mid - 2 * pad + K - 1                 # conv2 / block output length
    L_id = L_up + opad                              # adjust-conv output length
    L_ext = L_out + K - 1                           # conv1 eval'd on conv2's padded grid
    L_slab = L_ext + K - 1                          # input slab length
    off_up = lpad1 + E                              # offset of x_up inside the slab

    Cin_p = _round_up(Cin, 8)                 # keep sublane concat tile-aligned
    Cout_p = _round_up(Cout, 8)

    f32 = jnp.float32
    x = x_ncl.astype(f32)

    # --- input slab: stride-2 zero insertion + channel / length zero padding --
    x_up = jnp.zeros((N, Cin, L_up), f32).at[:, :, ::2].set(x)
    x_slab = jnp.pad(x_up, ((0, 0), (0, Cin_p - Cin),
                            (off_up, L_slab - off_up - L_up)))

    # --- weights: flip taps, flatten (tap, cin) onto one contraction axis -----
    def convt_weight_mat(w, cin_pad, cout_pad):
        # w: (C_in, C_out, K) -- PyTorch ConvTranspose1d layout.
        wf = jnp.transpose(jnp.flip(w, axis=-1), (1, 2, 0))      # (Cout, K, Cin)
        wf = jnp.pad(wf, ((0, cout_pad - wf.shape[0]), (0, 0),
                          (0, cin_pad - wf.shape[2])))
        return wf.reshape(cout_pad, wf.shape[1] * cin_pad).astype(mxu_dtype)

    W1 = convt_weight_mat(params["w1"], Cin_p, Cout_p)           # (Cout_p, K*Cin_p)
    W2 = convt_weight_mat(params["w2"], Cout_p, Cout_p)          # (Cout_p, K*Cout_p)
    b1 = jnp.pad(params["b1"].astype(f32), (0, Cout_p - Cout)).reshape(Cout_p, 1)
    b2 = jnp.pad(params["b2"].astype(f32), (0, Cout_p - Cout)).reshape(Cout_p, 1)

    has_adjust = Cin != Cout
    if has_adjust:
        wadj = jnp.transpose(params["w_adj"][:, :, 0])           # (Cout, Cin)
        Wadj = jnp.pad(wadj, ((0, Cout_p - Cout),
                              (0, Cin_p - Cin))).astype(mxu_dtype)
        badj = jnp.pad(params["b_adj"].astype(f32),
                       (0, Cout_p - Cout)).reshape(Cout_p, 1)
        extra_inputs = [Wadj, badj]
        extra_specs = [pl.BlockSpec((Cout_p, Cin_p), lambda n: (0, 0)),
                       pl.BlockSpec((Cout_p, 1), lambda n: (0, 0))]
    else:
        # identity = x itself, zero-padded / truncated to L_out (F.pad semantics).
        n_keep = min(L_in, L_out)
        xres = jnp.pad(x[:, :, :n_keep],
                       ((0, 0), (0, Cout_p - Cin), (0, L_out - n_keep)))
        extra_inputs = [xres]
        extra_specs = [pl.BlockSpec((1, Cout_p, L_out), lambda n: (n, 0, 0))]

    kernel = functools.partial(
        _fused_block_kernel, K=K, E=E, L_mid=L_mid, L_ext=L_ext, L_out=L_out,
        L_id=L_id, off_up=off_up, cout=Cout, has_adjust=has_adjust)

    def nbytes(a):
        return int(a.size) * a.dtype.itemsize

    flops = 2 * N * (K * Cin_p * Cout_p * L_ext
                     + K * Cout_p * Cout_p * L_out
                     + (Cin_p * Cout_p * L_out if has_adjust else 0))
    bytes_accessed = (nbytes(x_slab) + nbytes(W1) + nbytes(W2)
                      + nbytes(b1) + nbytes(b2)
                      + sum(nbytes(a) for a in extra_inputs)
                      + N * Cout * L_out * 4)

    return pl.pallas_call(
        kernel,
        grid=(N,),
        in_specs=[
            pl.BlockSpec((1, Cin_p, L_slab), lambda n: (n, 0, 0)),
            pl.BlockSpec((Cout_p, K * Cin_p), lambda n: (0, 0)),
            pl.BlockSpec((Cout_p, 1), lambda n: (0, 0)),
            pl.BlockSpec((Cout_p, K * Cout_p), lambda n: (0, 0)),
            pl.BlockSpec((Cout_p, 1), lambda n: (0, 0)),
        ] + extra_specs,
        out_specs=pl.BlockSpec((1, Cout, L_out), lambda n: (n, 0, 0)),
        out_shape=jax.ShapeDtypeStruct((N, Cout, L_out), jnp.float32),
        compiler_params=pltpu.CompilerParams(
            dimension_semantics=("parallel",)),
        cost_estimate=pl.CostEstimate(flops=flops, transcendentals=0,
                                      bytes_accessed=bytes_accessed),
    )(x_slab, W1, b1, W2, b2, *extra_inputs)


# ---------------- numpy reference (PyTorch semantics) for verification --------

def _np_convt1d(x, w, b, stride, padding, output_padding):
    N, Cin, Lin = x.shape
    _, Cout, K = w.shape
    Lout = (Lin - 1) * stride - 2 * padding + K + output_padding
    out = np.zeros((N, Cout, Lout), np.float64)
    for i in range(Lin):
        for k in range(K):
            l = i * stride - padding + k
            if 0 <= l < Lout:
                out[:, :, l] += x[:, :, i] @ w[:, :, k]
    return out + b[None, :, None]


def _numpy_reference(x, p, K, pad, opad):
    out = np.maximum(_np_convt1d(x, p["w1"], p["b1"], 2, pad, opad), 0.0)
    out = _np_convt1d(out, p["w2"], p["b2"], 1, pad, 0)
    if "w_adj" in p:
        identity = _np_convt1d(x, p["w_adj"], p["b_adj"], 2, 0, opad)
    else:
        identity = x.astype(np.float64)
    diff = out.shape[2] - identity.shape[2]
    if diff > 0:
        identity = np.pad(identity, ((0, 0), (0, 0), (0, diff)))
    elif diff < 0:
        identity = identity[:, :, :out.shape[2]]
    return np.maximum(out + identity, 0.0)


if __name__ == "__main__":
    K, PAD, OPAD = 3, 1, 1

    def make_params(key, cin, cout, with_adjust):
        ks = jax.random.split(key, 6)
        p = {
            "w1": 0.1 * jax.random.normal(ks[0], (cin, cout, K), jnp.float32),
            "b1": 0.1 * jax.random.normal(ks[1], (cout,), jnp.float32),
            "w2": 0.1 * jax.random.normal(ks[2], (cout, cout, K), jnp.float32),
            "b2": 0.1 * jax.random.normal(ks[3], (cout,), jnp.float32),
        }
        if with_adjust:
            p["w_adj"] = 0.1 * jax.random.normal(ks[4], (cin, cout, 1), jnp.float32)
            p["b_adj"] = 0.1 * jax.random.normal(ks[5], (cout,), jnp.float32)
        return p

    key = jax.random.PRNGKey(0)
    k1, k2, k3, k4 = jax.random.split(key, 4)

    # Tolerance accounts for bf16 MXU operands (f32 accumulation / epilogue).
    RTOL = ATOL = 3e-2

    # Case 1: in_channels != out_channels (adjust_channels path). NCL input.
    B, Cin, Cout, L = 2, 4, 8, 16
    p1 = make_params(k1, Cin, Cout, True)
    x1 = jax.random.normal(k2, (B, Cin, L), jnp.float32)
    out1 = jax.block_until_ready(
        decoder_residual_block(x1, p1, kernel_size=K, padding=PAD,
                               output_padding=OPAD))
    ref1 = _numpy_reference(np.asarray(x1, np.float64),
                            {k: np.asarray(v, np.float64) for k, v in p1.items()},
                            K, PAD, OPAD)
    np.testing.assert_allclose(np.asarray(out1), ref1, rtol=RTOL, atol=ATOL)

    # Case 2: in_channels == out_channels (identity passthrough path).
    C2 = 8
    p2 = make_params(k3, C2, C2, False)
    x2 = jax.random.normal(k4, (B, C2, L), jnp.float32)
    out2 = jax.block_until_ready(
        decoder_residual_block(x2, p2, kernel_size=K, padding=PAD,
                               output_padding=OPAD))
    ref2 = _numpy_reference(np.asarray(x2, np.float64),
                            {k: np.asarray(v, np.float64) for k, v in p2.items()},
                            K, PAD, OPAD)
    np.testing.assert_allclose(np.asarray(out2), ref2, rtol=RTOL, atol=ATOL)

    print("KERNEL_OK")
</pallas_src>

<mosaic_0001>
module attributes {stable_mosaic.version = 11 : i64} {
  func.func @_fused_block_kernel(%arg0: i32, %arg1: memref<1x8x36xf32, #tpu.memory_space<vmem>>, %arg2: memref<8x24xbf16, #tpu.memory_space<vmem>>, %arg3: memref<8x1xf32, #tpu.memory_space<vmem>>, %arg4: memref<8x24xbf16, #tpu.memory_space<vmem>>, %arg5: memref<8x1xf32, #tpu.memory_space<vmem>>, %arg6: memref<8x8xbf16, #tpu.memory_space<vmem>>, %arg7: memref<8x1xf32, #tpu.memory_space<vmem>>, %arg8: memref<1x8x32xf32, #tpu.memory_space<vmem>>) attributes {dimension_semantics = [#tpu.dimension_semantics<parallel>], iteration_bounds = array<i64: 2>, scalar_prefetch = 0 : i64, scratch_operands = 0 : i64, tpu.core_type = #tpu.core_type<tc>, window_params = [{transform_indices = @transform_0, window_bounds = array<i64: 1, 8, 36>}, {pipeline_mode = #tpu.pipeline_mode<synchronous>, transform_indices = @transform_1, window_bounds = array<i64: 8, 24>}, {pipeline_mode = #tpu.pipeline_mode<synchronous>, transform_indices = @transform_2, window_bounds = array<i64: 8, 1>}, {pipeline_mode = #tpu.pipeline_mode<synchronous>, transform_indices = @transform_3, window_bounds = array<i64: 8, 24>}, {pipeline_mode = #tpu.pipeline_mode<synchronous>, transform_indices = @transform_4, window_bounds = array<i64: 8, 1>}, {pipeline_mode = #tpu.pipeline_mode<synchronous>, transform_indices = @transform_5, window_bounds = array<i64: 8, 8>}, {pipeline_mode = #tpu.pipeline_mode<synchronous>, transform_indices = @transform_6, window_bounds = array<i64: 8, 1>}, {transform_indices = @transform_7, window_bounds = array<i64: 1, 8, 32>}]} {
    %c0 = arith.constant 0 : index
    %c0_0 = arith.constant 0 : index
    %c0_1 = arith.constant 0 : index
    %0 = vector.load %arg1[%c0, %c0_0, %c0_1] : memref<1x8x36xf32, #tpu.memory_space<vmem>>, vector<1x8x36xf32>
    %1 = vector.shape_cast %0 : vector<1x8x36xf32> to vector<8x36xf32>
    %2 = vector.extract_strided_slice %1 {offsets = [0, 0], sizes = [8, 34], strides = [1, 1]} : vector<8x36xf32> to vector<8x34xf32>
    %3 = vector.extract_strided_slice %1 {offsets = [0, 1], sizes = [8, 34], strides = [1, 1]} : vector<8x36xf32> to vector<8x34xf32>
    %4 = vector.extract_strided_slice %1 {offsets = [0, 2], sizes = [8, 34], strides = [1, 1]} : vector<8x36xf32> to vector<8x34xf32>
    %5 = tpu.concatenate %2, %3, %4 in 0 : vector<8x34xf32>, vector<8x34xf32>, vector<8x34xf32> -> vector<24x34xf32>
    %c0_2 = arith.constant 0 : index
    %c0_3 = arith.constant 0 : index
    %6 = vector.load %arg2[%c0_2, %c0_3] : memref<8x24xbf16, #tpu.memory_space<vmem>>, vector<8x24xbf16>
    %7 = arith.truncf %5 : vector<24x34xf32> to vector<24x34xbf16>
    %cst = arith.constant dense<0.000000e+00> : vector<8x34xf32>
    %8 = tpu.matmul %6, %7, %cst {dimension_numbers = #tpu.dot_dimension_numbers<[1], [0], [0], [1], [0, 0, 1, 1], [], []>} : vector<8x24xbf16>, vector<24x34xbf16>, vector<8x34xf32> -> vector<8x34xf32>
    %c0_4 = arith.constant 0 : index
    %c0_5 = arith.constant 0 : index
    %9 = vector.load %arg3[%c0_4, %c0_5] : memref<8x1xf32, #tpu.memory_space<vmem>>, vector<8x1xf32>
    %10 = vector.broadcast %9 : vector<8x1xf32> to vector<8x34xf32>
    %11 = arith.addf %8, %10 : vector<8x34xf32>
    %cst_6 = arith.constant 0.000000e+00 : f32
    %12 = vector.broadcast %cst_6 : f32 to vector<8x34xf32>
    %13 = arith.maximumf %11, %12 : vector<8x34xf32>
    %14 = tpu.iota {dimensions = array<i32: 1>} : vector<8x34xi32>
    %c1_i32 = arith.constant 1 : i32
    %15 = vector.broadcast %c1_i32 : i32 to vector<8x34xi32>
    %16 = arith.cmpi sge, %14, %15 : vector<8x34xi32>
    %c33_i32 = arith.constant 33 : i32
    %17 = vector.broadcast %c33_i32 : i32 to vector<8x34xi32>
    %18 = arith.cmpi slt, %14, %17 : vector<8x34xi32>
    %19 = arith.andi %16, %18 : vector<8x34xi1>
    %cst_7 = arith.constant 0.000000e+00 : f32
    %20 = vector.broadcast %cst_7 : f32 to vector<8x34xf32>
    %21 = arith.select %19, %13, %20 : vector<8x34xi1>, vector<8x34xf32>
    %22 = vector.extract_strided_slice %21 {offsets = [0, 0], sizes = [8, 32], strides = [1, 1]} : vector<8x34xf32> to vector<8x32xf32>
    %23 = vector.extract_strided_slice %21 {offsets = [0, 1], sizes = [8, 32], strides = [1, 1]} : vector<8x34xf32> to vector<8x32xf32>
    %24 = vector.extract_strided_slice %21 {offsets = [0, 2], sizes = [8, 32], strides = [1, 1]} : vector<8x34xf32> to vector<8x32xf32>
    %25 = tpu.concatenate %22, %23, %24 in 0 : vector<8x32xf32>, vector<8x32xf32>, vector<8x32xf32> -> vector<24x32xf32>
    %c0_8 = arith.constant 0 : index
    %c0_9 = arith.constant 0 : index
    %26 = vector.load %arg4[%c0_8, %c0_9] : memref<8x24xbf16, #tpu.memory_space<vmem>>, vector<8x24xbf16>
    %27 = arith.truncf %25 : vector<24x32xf32> to vector<24x32xbf16>
    %cst_10 = arith.constant dense<0.000000e+00> : vector<8x32xf32>
    %28 = tpu.matmul %26, %27, %cst_10 {dimension_numbers = #tpu.dot_dimension_numbers<[1], [0], [0], [1], [0, 0, 1, 1], [], []>} : vector<8x24xbf16>, vector<24x32xbf16>, vector<8x32xf32> -> vector<8x32xf32>
    %c0_11 = arith.constant 0 : index
    %c0_12 = arith.constant 0 : index
    %29 = vector.load %arg5[%c0_11, %c0_12] : memref<8x1xf32, #tpu.memory_space<vmem>>, vector<8x1xf32>
    %30 = vector.broadcast %29 : vector<8x1xf32> to vector<8x32xf32>
    %31 = arith.addf %28, %30 : vector<8x32xf32>
    %32 = vector.extract_strided_slice %1 {offsets = [0, 2], sizes = [8, 32], strides = [1, 1]} : vector<8x36xf32> to vector<8x32xf32>
    %c0_13 = arith.constant 0 : index
    %c0_14 = arith.constant 0 : index
    %33 = vector.load %arg6[%c0_13, %c0_14] : memref<8x8xbf16, #tpu.memory_space<vmem>>, vector<8x8xbf16>
    %34 = arith.truncf %32 : vector<8x32xf32> to vector<8x32xbf16>
    %cst_15 = arith.constant dense<0.000000e+00> : vector<8x32xf32>
    %35 = tpu.matmul %33, %34, %cst_15 {dimension_numbers = #tpu.dot_dimension_numbers<[1], [0], [0], [1], [0, 0, 1, 1], [], []>} : vector<8x8xbf16>, vector<8x32xbf16>, vector<8x32xf32> -> vector<8x32xf32>
    %36 = tpu.iota {dimensions = array<i32: 1>} : vector<8x32xi32>
    %c32_i32 = arith.constant 32 : i32
    %37 = vector.broadcast %c32_i32 : i32 to vector<8x32xi32>
    %38 = arith.cmpi slt, %36, %37 : vector<8x32xi32>
    %c0_16 = arith.constant 0 : index
    %c0_17 = arith.constant 0 : index
    %39 = vector.load %arg7[%c0_16, %c0_17] : memref<8x1xf32, #tpu.memory_space<vmem>>, vector<8x1xf32>
    %cst_18 = arith.constant 0.000000e+00 : f32
    %40 = vector.shape_cast %39 : vector<8x1xf32> to vector<8x1xf32>
    %41 = vector.broadcast %40 : vector<8x1xf32> to vector<8x32xf32>
    %42 = vector.broadcast %cst_18 : f32 to vector<8x32xf32>
    %43 = arith.select %38, %41, %42 : vector<8x32xi1>, vector<8x32xf32>
    %44 = arith.addf %35, %43 : vector<8x32xf32>
    %45 = arith.addf %31, %44 : vector<8x32xf32>
    %cst_19 = arith.constant 0.000000e+00 : f32
    %46 = vector.broadcast %cst_19 : f32 to vector<8x32xf32>
    %47 = arith.maximumf %45, %46 : vector<8x32xf32>
    %c0_20 = arith.constant 0 : index
    %c0_21 = arith.constant 0 : index
    %c0_22 = arith.constant 0 : index
    %48 = vector.load %arg8[%c0_20, %c0_21, %c0_22] : memref<1x8x32xf32, #tpu.memory_space<vmem>>, vector<1x8x32xf32>
    %49 = vector.shape_cast %48 : vector<1x8x32xf32> to vector<8x32xf32>
    %50 = vector.shape_cast %47 : vector<8x32xf32> to vector<1x8x32xf32>
    tpu.vector_store %arg8[%c0_20, %c0_21, %c0_22], %50 {strides = array<i32>} : memref<1x8x32xf32, #tpu.memory_space<vmem>>, vector<1x8x32xf32>,
    return
  }
  func.func @transform_0(%arg0: i32) -> (i32, i32, i32) {
    %c0_i32 = arith.constant 0 : i32
    %c0_i32_0 = arith.constant 0 : i32
    %c0_i32_1 = arith.constant 0 : i32
    return %arg0, %c0_i32, %c0_i32_0 : i32, i32, i32
  }
  func.func @transform_1(%arg0: i32) -> (i32, i32) {
    %c0_i32 = arith.constant 0 : i32
    %c0_i32_0 = arith.constant 0 : i32
    %c0_i32_1 = arith.constant 0 : i32
    return %c0_i32, %c0_i32_0 : i32, i32
  }
  func.func @transform_2(%arg0: i32) -> (i32, i32) {
    %c0_i32 = arith.constant 0 : i32
    %c0_i32_0 = arith.constant 0 : i32
    %c0_i32_1 = arith.constant 0 : i32
    return %c0_i32, %c0_i32_0 : i32, i32
  }
  func.func @transform_3(%arg0: i32) -> (i32, i32) {
    %c0_i32 = arith.constant 0 : i32
    %c0_i32_0 = arith.constant 0 : i32
    %c0_i32_1 = arith.constant 0 : i32
    return %c0_i32, %c0_i32_0 : i32, i32
  }
  func.func @transform_4(%arg0: i32) -> (i32, i32) {
    %c0_i32 = arith.constant 0 : i32
    %c0_i32_0 = arith.constant 0 : i32
    %c0_i32_1 = arith.constant 0 : i32
    return %c0_i32, %c0_i32_0 : i32, i32
  }
  func.func @transform_5(%arg0: i32) -> (i32, i32) {
    %c0_i32 = arith.constant 0 : i32
    %c0_i32_0 = arith.constant 0 : i32
    %c0_i32_1 = arith.constant 0 : i32
    return %c0_i32, %c0_i32_0 : i32, i32
  }
  func.func @transform_6(%arg0: i32) -> (i32, i32) {
    %c0_i32 = arith.constant 0 : i32
    %c0_i32_0 = arith.constant 0 : i32
    %c0_i32_1 = arith.constant 0 : i32
    return %c0_i32, %c0_i32_0 : i32, i32
  }
  func.func @transform_7(%arg0: i32) -> (i32, i32, i32) {
    %c0_i32 = arith.constant 0 : i32
    %c0_i32_0 = arith.constant 0 : i32
    %c0_i32_1 = arith.constant 0 : i32
    return %arg0, %c0_i32, %c0_i32_0 : i32, i32, i32
  }
}

</mosaic_0001>

<bundles_post_ra>
// kernel: tpu_custom_call.1
= control target key start
LH: loop header
LB: loop body
LE: loop exit
PB: predicated region body
PF: predicated region fallthrough
CT: control target
= control target key end

     0   :  { %12 = vsyncpa [#allocation3], 0  ;;  %s903_s0 = inlined_call_operand.vmem [shape: f32[2,8,36], index: 0, kind: input, shape index: {}]   ;;  %s904_s1 = inlined_call_operand.vmem [shape: bf16[8,24], index: 1, kind: input, shape index: {}]   ;;  %s905_s2 = inlined_call_operand.vmem [shape: f32[8,1], index: 2, kind: input, shape index: {}]   ;;  %s906_s3 = inlined_call_operand.vmem [shape: bf16[8,24], index: 3, kind: input, shape index: {}]   ;;  %s907_s4 = inlined_call_operand.vmem [shape: f32[8,1], index: 4, kind: input, shape index: {}]   ;;  %s908_s5 = inlined_call_operand.vmem [shape: bf16[8,8], index: 5, kind: input, shape index: {}]   ;;  %s909_s6 = inlined_call_operand.vmem [shape: f32[8,1], index: 6, kind: input, shape index: {}]   ;;  %s910_s7 = inlined_call_operand.hbm [shape: f32[2,8,32], index: 7, kind: output, shape index: {}]  }
   0x1   :  { %14 = vsyncpa [#allocation3 + $0x1], 0  ;;  %s756_s24 = smov 0   ;;  %s758_s25 = smov 0  }
   0x2   :  { %s760_s26 = smov 0   ;;  %s762_s27 = smov 0  }
   0x3 LB: > { %s777_s28 = sadd.s32 4294967295, %s707_s27   ;;  %s546_s29 = sadd.s32 4294967294, %s707_s27   ;;  %s707_s27 = sphi %s762_s27, %s918_s27   ;;  %s703_s26 = sphi %s760_s26, %s917_s26   ;;  %s699_s25 = sphi %s758_s25, %s916_s25   ;;  %s695_s24 = sphi %s756_s24, %s915_s24  }
   0x4   : > { %s781_s30 = sadd.s32 1, %s707_s27   ;;  %s179_s8 = sadd.s32 1, %s703_s26 }
   0x5   : > { %s176_s9 = ssub.s32 %s707_s27, %s781_s30  ;;  %p189_p0 = scmp.ne.s32.totalorder %s703_s26, %s699_s25 }
   0x6   : > { %p177_p1 = scmp.eq.s32.totalorder %s176_s9, 0  ;;  %p190_p2 = scmp.eq.s32.totalorder %s777_s28, 1 }
   0x7   : > { %p195_p3 = scmp.ne.s32.totalorder %s699_s25, %s695_s24  ;;  %p196_p4 = scmp.eq.s32.totalorder %s546_s29, 1 }
   0x8   : > { %s792_s10 = scalar_select %p177_p1, %s703_s26, %s179_s8  }
   0x9   : > { %p794_p5 = por %p190_p2, %p189_p0  ;;  %p798_p6 = por %p196_p4, %p195_p3 }
   0xa   : > { %p549_p7 = scmp.ge.s32.totalorder %s707_s27, 1  ;;  %p239_p8 = scmp.lt.s32.totalorder %s707_s27, 3 }
   0xc   : > { %p240_p9 = pnand %p549_p7, %p239_p8 }
   0xd   : > { %p270_p10 = scmp.lt.s32.totalorder (!%p240_p9), %s777_s28, 1  ;;  %v709_v0 = vmov (!%p240_p9), 0.0   ;;  %vm710_vm0 = vmmov (!%p240_p9), 0   ;;  %v286_v1 = vld [vmem:[%s905_s2] sm:$0xff] (!%p240_p9)  ;;  %v711_v2 = vmov (!%p240_p9), 0   ;;  %s712_s20 = smov (!%p240_p9), 127   ;;  %v341_v10 = vlaneseq (!%p240_p9) }
   0xe   : > { %243 = sbr.rel (%p240_p9) target bundleno = 734 (0x2de), region = 48  ;;  %570 = vmatprep.subr.bf16.mxu0 (!%p240_p9), %v709_v0  ;;  %578 = vmatprep.subr.bf16.mxu1 (!%p240_p9), %v709_v0  ;;  %s713_s21 = smov (!%p240_p9), 126   ;;  %vm296_vm1 = vcmask (!%p240_p9), 1043456   ;;  %v283_v9 = vld [vmem:[%s904_s1] sm:$0xf] (!%p240_p9)  ;;  %vm292_vm2 = vcmask (!%p240_p9), 195584  }
   0xf   : > { %574 = vmatprep.mubr.msk.bf16.mxu0 (!%p240_p9), %vm710_vm0, %v709_v0  ;;  %582 = vmatprep.mubr.msk.bf16.mxu1 (!%p240_p9), %vm710_vm0, %v709_v0  ;;  %v342_v11 = vand.u32 (!%p240_p9), 127, %v341_v10  ;;  %v412_v22 = vld [vmem:[%s909_s6] sm:$0xff] (!%p240_p9)  ;;  %vm714_vm6 = vmmov (!%p240_p9), 1   ;;  %vm422_vm8 = vcmask (!%p240_p9), 64512   ;;  %s267_s18 = sand.u32 (!%p240_p9), 1, %s699_s25   ;;  %vm471_vm10 = vcmask (!%p240_p9), 261120  }
  0x10   : > { %643 = vset.pattern.permute.xlu1 (!%p240_p9), %v711_v2  ;;  %644 = vset.pattern.permute.xlu0 (!%p240_p9), %v711_v2  ;;  %v357_v23 = vld [vmem:[%s907_s4] sm:$0xff] (!%p240_p9) }
  0x11   : > { %289 = vperm.xlu1 (!%p240_p9), %643, %v286_v1   ;;  %vm343_vm3 = vcmp.ge.s32.totalorder (!%p240_p9), %v342_v11, 1  ;;  %vm344_vm4 = vcmp.lt.s32.totalorder (!%p240_p9), %v342_v11, 33  ;;  %v354_v30 = vld [vmem:[%s906_s3] sm:$0xf] (!%p240_p9)  ;;  %vm411_vm9 = vcmp.lt.s32.totalorder (!%p240_p9), %v342_v11, 32 }
  0x12   : > { %vm826_vm5 = vmand (!%p240_p9), %vm343_vm3, %vm344_vm4  ;;  %v409_v32 = vld [vmem:[%s908_s5] sm:$0xf] (!%p240_p9) }
  0x13   : > { %vm553_vm7 = vmpackc.low (!%p240_p9), %vm714_vm6, %vm826_vm5 }
  0x15   : > { %s271_s13 = scalar_select %p270_p10, %s777_s28, 1 }
  0x17   : > { %s551_s14 = sshll.u32 %s271_s13, 3  ;;  %s715_s13 = smov [#allocation2]  }
  0x18   : > { %s273_s19 = scalar_lea.vmem %s903_s0, %s551_s14  ;;  %s649_s14 = sshll.u32 %s715_s13, 4  ;;  %s650_s14 = int_to_ptr.vmem [resolvable:$false] %s649_s14 }
  0x19   : > { %v275_v3 = vld [vmem:[%s273_s19] sm:$0xff]  ;;  %s550_s19 = sshll.u32 %s267_s18, 3  ;;  %s651_s15 = scalar_lea.vmem %s650_s14, 256 }
  0x1a   : > { %277 = vrot.lane.b32.xlu0 %v275_v3, %s712_s20  ;;  %v410_v21 = vpack.c.bf16 %v275_v3, %v275_v3 }
  0x1e   : > { %280 = vrot.lane.b32.xlu0 %v275_v3, %s713_s21 }
  0x8c   : > { %v278_v4 = vpop.permute.xlu0 %277 }
  0x8d   : > { %v284_v5 = vpack.c.bf16 %v278_v4, %v275_v3 }
  0x8f   : > { %571 = vmatpush3.bf16.msra.mxu0 %v284_v5 }
  0x90   : > { %v281_v6 = vpop.permute.xlu0 %280  ;;  %572 = vmatprep.subr.bf16.mxu0 %v709_v0  ;;  %v290_v12 = vpop.permute.xlu1 %289 }
  0x91   : > { %v285_v7 = vpack.c.bf16 %v281_v6, %v281_v6 }
  0x93   : > { %v298_v8 = vsel %vm296_vm1, %v285_v7, 0 }
  0x94   : > { %573 = vmatpush3.bf16.msra.mxu0 %v298_v8 }
  0x97   : > { %575 = vmatmul.mubr.msk.bf16.vlgmr.msra.gmra.mrb[0].mxu0 %vm292_vm2, %v283_v9 }
 0x16a   : > { %v334_v13 = vpop.f32.mrb[0].mxu0 }
 0x16b   : > { %v335_v14 = vadd.f32 %v334_v13, %v290_v12  ;;  %v576_v15 = vpop.f32.mrb[1].mxu0 }
 0x16c   : > { %v337_v16 = vpop.f32.mrb[2].mxu0 }
 0x16d   : > { %v340_v18 = vmax.f32 %v335_v14, 0.0  ;;  %v577_v19 = vpop.f32.mrb[3].mxu0 }
 0x16f   : > { %v346_v20 = vsel %vm826_vm5, %v340_v18, 0.0 }
 0x170   : > { %351 = vrot.lane.b32.xlu0 %v346_v20, %s713_s21  ;;  %348 = vrot.lane.b32.xlu1 %v346_v20, %s712_s20  ;;  %s559_s20 = sshll.u32 %s777_s28, 7  ;;  %s474_s28 = scalar_lea.sflag [#allocation3], %s267_s18 }
 0x171   : > { %s861_s8 = scalar_lea.hbm %s910_s7, %s559_s20 }
 0x174   : > { %420 = vrot.lane.b32.xlu1 %v410_v21, %s713_s21  ;;  %415 = vperm.xlu0 %644, %v412_v22   ;;  %s269_s21 = scalar_lea.vmem [#allocation2], %s550_s19 }
 0x175   : > { %s487_s22 = sshll.u32 %s269_s21, 4  ;;  %s863_s22 = int_to_ptr.vmem [resolvable:$true] %s487_s22 }
 0x176   : > { %s645_s9 = scalar_lea.vmem %s863_s22, 128  ;;  %p652_p0 = scmp.lt.s32.totalorder %s863_s22, %s650_s14 }
 0x177   : > { %p646_p11 = scmp.ne.s32.totalorder %s863_s22, %s645_s9  ;;  %p653_p1 = scmp.lt.s32.totalorder %s651_s15, %s645_s9 }
 0x178   : > { %360 = vperm.xlu1 %643, %v357_v23  }
 0x179   : > { %p647_p12 = pnand %p646_p11, %p794_p5  ;;  %p654_p2 = por %p653_p1, %p652_p0 }
 0x17b   : > { %p648_p13 = pneg %p647_p12 }
 0x17d   : > { %p655_p3 = pnand %p654_p2, %p648_p13 }
 0x1e2   : > { %v352_v24 = vpop.permute.xlu0 %351  ;;  %v349_v25 = vpop.permute.xlu1 %348 }
 0x1e3   : > { %v554_v26 = vpack.c.bf16 %v349_v25, %v340_v18  ;;  %v356_v27 = vpack.c.bf16 %v352_v24, %v352_v24 }
 0x1e5   : > { %579 = vmatpush3.bf16.msk.msra.mxu1 %vm553_vm7, %v554_v26  ;;  %v367_v29 = vsel %vm296_vm1, %v356_v27, 0 }
 0x1e6   : > { %580 = vmatprep.subr.bf16.mxu1 %v709_v0  ;;  %v421_v28 = vpop.permute.xlu1 %420 }
 0x1e7   : > { %v427_v31 = vsel %vm296_vm1, %v421_v28, 0 }
 0x1e9   : > { %581 = vmatpush3.bf16.msra.mxu1 %v367_v29 }
 0x1ea   : > { %586 = vmatprep.subr.bf16.mxu1 %v709_v0 }
 0x1ec   : > { %583 = vmatmul.mubr.msk.bf16.vlgmr.msra.gmra.mrb[0].mxu1 %vm292_vm2, %v354_v30 }
 0x1ed   : > { %587 = vmatpush3.bf16.msra.mxu1 %v427_v31  ;;  %588 = vmatprep.mubr.msk.bf16.mxu1 %vm710_vm0, %v709_v0 }
 0x1f3   : > { %v416_v33 = vpop.permute.xlu0 %415 }
 0x1f4   : > { %v418_v34 = vsel %vm411_vm9, %v416_v33, 0.0 }
 0x1f7   : > { %v361_v35 = vpop.permute.xlu1 %360 }
 0x1f8   : > { %589 = vmatmul.mubr.msk.bf16.vlgmr.msra.gmra.mrb[0].mxu1 %vm422_vm8, %v409_v32  ;;  %v592_v36 = vadd.f32 %v418_v34, %v361_v35 }
 0x2cb   : > { %v463_v37 = vpop.f32.mrb[0].mxu1 }
 0x2cc   : > { %v593_v38 = vadd.f32 %v592_v36, %v463_v37  ;;  %v590_v39 = vpop.f32.mrb[1].mxu1 }
 0x2cd   : > { %v466_v40 = vpop.f32.mrb[2].mxu1 }
 0x2ce   : > { %v470_v41 = vmax.f32 %v593_v38, 0.0  ;;  %v591_v42 = vpop.f32.mrb[3].mxu1 }
 0x2d0   : > { %472 = vst.msk [vmem:[%s269_s21] sm:$0xff] %vm471_vm10, %v470_v41 }
 0x2d1   : > { %658 = shalt.err (!%p655_p3)
}
 0x2d2   : > { %s659_s16 = scalar_lea.hbm %s861_s8, 128  ;;  %s663_s19 = scalar_lea.hbm %s910_s7, 256 }
 0x2d3   : > { %p660_p4 = scmp.ne.s32.totalorder %s861_s8, %s659_s16  ;;  %p664_p9 = scmp.lt.u32.totalorder %s861_s8, %s910_s7 }
 0x2d4   : > { %p665_p10 = scmp.lt.u32.totalorder %s663_s19, %s659_s16  ;;  %p667_p12 = scmp.lt.u32.totalorder %s659_s16, %s861_s8 }
 0x2d5   : > { %p661_p7 = pnand %p660_p4, %p794_p5 }
 0x2d6   : > { %p666_p11 = por %p665_p10, %p664_p9 }
 0x2d7   : > { %p662_p8 = pneg %p661_p7 }
 0x2d8   : > { %p668_p13 = por %p667_p12, %p666_p11 }
 0x2da   : > { %p669_p0 = pnand %p668_p13, %p662_p8 }
 0x2dc   : > { %672 = shalt.err (!%p669_p0)
}
 0x2dd   : > { %598 = dma.vmem_to_hbm [thread:$0]  (%p794_p5), %s863_s22, 128, %s861_s8, %s474_s28  }
 0x2de PF: > { %p604_p1 = scmp.ge.s32.totalorder %s707_s27, 2  ;;  %s499_s23 = sand.u32 1, %s695_s24  }
 0x2df   : > { %s500_s29 = scalar_lea.sflag [#allocation3], %s499_s23 }
 0x2e0   : > { %p601_p2 = pnand %p604_p1, %p798_p6 }
 0x2e2   : > { %690 = dma.done.wait (!%p601_p2), %s500_s29, 128  }
 0x2e3   : > { %692 = vsyncadd (!%p601_p2), %s500_s29, 4294967168  ;;  %p17_p3 = scmp.ge.s32.totalorder %s781_s30, 4   ;;  %s915_s24 = smov %s699_s25 }
 0x2e4   : > { %s916_s25 = smov %s703_s26  ;;  %s917_s26 = smov %s792_s10 }
 0x2e5   : > { %s918_s27 = smov %s781_s30  ;;  %19 = sbr.rel (!%p17_p3) target bundleno = 3 (0x3), region = 83 }
 0x2ec   :  { %505 = vsyncpa [#allocation3], 1 }
 0x2ed   :  { %507 = vsyncpa [#allocation3 + $0x1], 1 }

</bundles_post_ra>
